<compile_context>
chip_gen: v7x
topology: tpu7x:2x2x1
jax: 0.10.0
libtpu: 0.0.40
codegen_flags: <defaults>
</compile_context>

<pallas_src>
import math
import functools

import jax
import jax.numpy as jnp
from jax import lax
from jax.experimental import pallas as pl
from jax.experimental.pallas import tpu as pltpu


def mha_kernel(x_ref, wqkv_ref, bqkv_ref, wo_ref, bo_ref, o_ref,
               *, batch, seq, num_heads, d_k, approx_recip):
    """Whole problem in one grid step (B folded into matmul rows).

    x_ref:    (B*S, D)  activations (compute dtype, e.g. bf16)
    wqkv_ref: (D, 3D)   fused [Wq*scale | Wk | Wv]   (compute dtype)
    bqkv_ref: (1, 3D)   fused [bq*scale | bk | bv]   (f32)
    wo_ref:   (D, D)    output projection weight     (compute dtype)
    bo_ref:   (1, D)    output projection bias       (f32)
    o_ref:    (B*S, D)  output
    """
    D = num_heads * d_k

    # Fused Q/K/V projection for ALL batch rows: one MXU pass, M=B*S, N=3D,
    # f32 accumulation, bias added in f32.
    qkv = jnp.dot(x_ref[...], wqkv_ref[...],
                  preferred_element_type=jnp.float32) + bqkv_ref[0]
    # Low-precision copy for the subsequent MXU contractions (never feed f32
    # operands to the MXU in the production config); softmax stays in f32.
    qkv_lo = qkv.astype(wqkv_ref.dtype)

    wo = wo_ref[...]                                          # (D, D)
    bo = bo_ref[0]                                            # (D,)

    # Static unroll over (batch, head).  The merged-head context is never
    # materialized: out_b = bo + sum_h ctx_{b,h} @ Wo[h*d_k:(h+1)*d_k, :]
    # -> no lane-axis concat, no VMEM scratch round trip, no masked column
    # stores.
    for b in range(batch):
        rows = slice(b * seq, (b + 1) * seq)
        out_b = None
        for h in range(num_heads):
            q_h = qkv_lo[rows, 0 * D + h * d_k: 0 * D + (h + 1) * d_k]
            k_h = qkv_lo[rows, 1 * D + h * d_k: 1 * D + (h + 1) * d_k]
            v_h = qkv_lo[rows, 2 * D + h * d_k: 2 * D + (h + 1) * d_k]

            # scores = (q*scale) . k  -- 1/sqrt(d_k) is folded into Wq/bq at
            # init.  Contract the trailing dim of BOTH operands: no explicit
            # transpose, the MXU handles the transposed-RHS contraction.
            scores = lax.dot_general(
                q_h, k_h, (((1,), (1,)), ((), ())),
                preferred_element_type=jnp.float32)           # (S, S) f32

            # Numerically-stable softmax in f32; denominator via EUP
            # reciprocal when approx_recip is set.
            m = jnp.max(scores, axis=-1, keepdims=True)
            e = jnp.exp(scores - m)
            s = jnp.sum(e, axis=-1, keepdims=True)
            p = e * pl.reciprocal(s, approx=approx_recip)

            ctx_h = jnp.dot(p.astype(v_h.dtype), v_h,
                            preferred_element_type=jnp.float32)  # (S, d_k)

            # Per-head slice of the output projection (sublane-aligned row
            # slice of Wo), accumulated in f32 registers.
            wo_h = wo[h * d_k:(h + 1) * d_k, :]                  # (d_k, D)
            contrib = jnp.dot(ctx_h.astype(wo.dtype), wo_h,
                              preferred_element_type=jnp.float32)
            out_b = contrib if out_b is None else out_b + contrib

        o_ref[rows, :] = (out_b + bo).astype(o_ref.dtype)


def fuse_mha_params(params, *, num_heads, compute_dtype=jnp.bfloat16):
    """One-time (init-time) parameter fusion, off the per-call hot path.

    Concatenates Wq|Wk|Wv into a single (D, 3D) weight, folds the 1/sqrt(d_k)
    attention scale into the Q block (weight and bias), and casts matmul
    operands to the MXU compute dtype.  Biases stay f32 (added after the
    f32-accumulated dot)."""
    D = params["wq"].shape[0]
    d_k = D // num_heads
    scale = 1.0 / math.sqrt(d_k)
    wqkv = jnp.concatenate(
        [params["wq"] * scale, params["wk"], params["wv"]], axis=1)   # (D,3D)
    bqkv = jnp.concatenate(
        [params["bq"] * scale, params["bk"], params["bv"]]).reshape(1, 3 * D)
    return {
        "wqkv": wqkv.astype(compute_dtype),
        "bqkv": bqkv.astype(jnp.float32),
        "wo": params["wo"].astype(compute_dtype),
        "bo": params["bo"].reshape(1, D).astype(jnp.float32),
    }


def multi_head_attention(x, fused, *, num_heads, approx_recip=True):
    """x: (B, S, D).  fused: output of fuse_mha_params."""
    B, S, D = x.shape
    assert D % num_heads == 0
    d_k = D // num_heads
    compute_dtype = fused["wqkv"].dtype

    # Fold B into the row dim; cast activations to the MXU compute dtype.
    x2d = x.reshape(B * S, D).astype(compute_dtype)

    kernel = functools.partial(
        mha_kernel, batch=B, seq=S, num_heads=num_heads, d_k=d_k,
        approx_recip=approx_recip)

    def full(shape):
        return pl.BlockSpec(shape, lambda i: (0, 0))

    out2d = pl.pallas_call(
        kernel,
        out_shape=jax.ShapeDtypeStruct((B * S, D), x.dtype),
        grid_spec=pltpu.PrefetchScalarGridSpec(
            num_scalar_prefetch=0,
            # Single grid step: each extra step costs ~0.35us on single-TC
            # chips and the work per batch element is far too small to pay
            # the v7x cross-TC split at these shapes.
            grid=(1,),
            in_specs=[full((B * S, D)),
                      full((D, 3 * D)),
                      full((1, 3 * D)),
                      full((D, D)),
                      full((1, D))],
            out_specs=full((B * S, D)),
        ),
        compiler_params=pltpu.CompilerParams(
            dimension_semantics=("arbitrary",)),
    )(x2d, fused["wqkv"], fused["bqkv"], fused["wo"], fused["bo"])

    return out2d.reshape(B, S, D)


def reference_mha(x, params, *, num_heads):
    """Pure-JAX reference mirroring the PyTorch forward (dropout = identity)."""
    B, S, D = x.shape
    d_k = D // num_heads

    def lin(t, w, b):
        return t @ w + b

    q = lin(x, params["wq"], params["bq"])
    k = lin(x, params["wk"], params["bk"])
    v = lin(x, params["wv"], params["bv"])

    def split(t):  # (B,S,D) -> (B,h,S,d_k)
        return t.reshape(B, S, num_heads, d_k).transpose(0, 2, 1, 3)

    q, k, v = split(q), split(k), split(v)
    scores = jnp.einsum("bhqd,bhkd->bhqk", q, k) / math.sqrt(d_k)
    p = jax.nn.softmax(scores, axis=-1)
    ctx = jnp.einsum("bhqk,bhkd->bhqd", p, v)
    ctx = ctx.transpose(0, 2, 1, 3).reshape(B, S, D)
    return lin(ctx, params["wo"], params["bo"])


def init_params(key, d_model):
    ks = jax.random.split(key, 8)
    scale = 1.0 / math.sqrt(d_model)

    def w(k):
        return jax.random.uniform(k, (d_model, d_model), jnp.float32,
                                  minval=-scale, maxval=scale)

    def b(k):
        return jax.random.uniform(k, (d_model,), jnp.float32,
                                  minval=-scale, maxval=scale)

    return {
        "wq": w(ks[0]), "bq": b(ks[1]),
        "wk": w(ks[2]), "bk": b(ks[3]),
        "wv": w(ks[4]), "bv": b(ks[5]),
        "wo": w(ks[6]), "bo": b(ks[7]),
    }


if __name__ == "__main__":
    # Small shapes: batch=2, seq=16 (e.g. flattened H*W), d_model=32, heads=4.
    B, S, D, H = 2, 16, 32, 4

    key = jax.random.PRNGKey(0)
    kx, kp = jax.random.split(key)
    x = jax.random.normal(kx, (B, S, D), dtype=jnp.float32)
    params = init_params(kp, D)

    ref = reference_mha(x, params, num_heads=H)

    # 1) Strict structural-correctness check: f32 operands + exact reciprocal
    #    at a tight tolerance (catches head-slicing / weight-fusion bugs).
    fused_f32 = fuse_mha_params(params, num_heads=H,
                                compute_dtype=jnp.float32)
    out_strict = multi_head_attention(x, fused_f32, num_heads=H,
                                      approx_recip=False)
    out_strict = jax.block_until_ready(out_strict)
    assert out_strict.shape == (B, S, D)
    assert jnp.allclose(out_strict, ref, atol=1e-4, rtol=1e-4), \
        "strict f32 mismatch vs reference"

    # 2) Production config: bf16 MXU operands + EUP approximate reciprocal.
    fused_bf16 = fuse_mha_params(params, num_heads=H,
                                 compute_dtype=jnp.bfloat16)
    out = multi_head_attention(x, fused_bf16, num_heads=H, approx_recip=True)
    out = jax.block_until_ready(out)
    assert out.shape == (B, S, D)
    assert jnp.allclose(out, ref, atol=3e-2, rtol=3e-2), \
        "bf16 mismatch vs reference"

    print("KERNEL_OK")
</pallas_src>

<mosaic_0001>
module attributes {stable_mosaic.version = 11 : i64} {
  func.func @mha_kernel(%arg0: i32, %arg1: memref<32x32xf32, #tpu.memory_space<vmem>>, %arg2: memref<32x96xf32, #tpu.memory_space<vmem>>, %arg3: memref<1x96xf32, #tpu.memory_space<vmem>>, %arg4: memref<32x32xf32, #tpu.memory_space<vmem>>, %arg5: memref<1x32xf32, #tpu.memory_space<vmem>>, %arg6: memref<32x32xf32, #tpu.memory_space<vmem>>) attributes {dimension_semantics = [#tpu.dimension_semantics<arbitrary>], iteration_bounds = array<i64: 1>, scalar_prefetch = 0 : i64, scratch_operands = 0 : i64, tpu.core_type = #tpu.core_type<tc>, window_params = [{pipeline_mode = #tpu.pipeline_mode<synchronous>, transform_indices = @transform_0, window_bounds = array<i64: 32, 32>}, {pipeline_mode = #tpu.pipeline_mode<synchronous>, transform_indices = @transform_1, window_bounds = array<i64: 32, 96>}, {pipeline_mode = #tpu.pipeline_mode<synchronous>, transform_indices = @transform_2, window_bounds = array<i64: 1, 96>}, {pipeline_mode = #tpu.pipeline_mode<synchronous>, transform_indices = @transform_3, window_bounds = array<i64: 32, 32>}, {pipeline_mode = #tpu.pipeline_mode<synchronous>, transform_indices = @transform_4, window_bounds = array<i64: 1, 32>}, {pipeline_mode = #tpu.pipeline_mode<synchronous>, transform_indices = @transform_5, window_bounds = array<i64: 32, 32>}]} {
    %c0 = arith.constant 0 : index
    %c0_0 = arith.constant 0 : index
    %0 = vector.load %arg1[%c0, %c0_0] : memref<32x32xf32, #tpu.memory_space<vmem>>, vector<32x32xf32>
    %c0_1 = arith.constant 0 : index
    %c0_2 = arith.constant 0 : index
    %1 = vector.load %arg2[%c0_1, %c0_2] : memref<32x96xf32, #tpu.memory_space<vmem>>, vector<32x96xf32>
    %cst = arith.constant dense<0.000000e+00> : vector<32x96xf32>
    %2 = tpu.matmul %0, %1, %cst {dimension_numbers = #tpu.dot_dimension_numbers<[1], [0], [0], [1], [0, 0, 1, 1], [], []>} : vector<32x32xf32>, vector<32x96xf32>, vector<32x96xf32> -> vector<32x96xf32>
    %c0_3 = arith.constant 0 : index
    %c0_4 = arith.constant 0 : index
    %3 = vector.load %arg3[%c0_3, %c0_4] : memref<1x96xf32, #tpu.memory_space<vmem>>, vector<1x96xf32>
    %4 = vector.shape_cast %3 : vector<1x96xf32> to vector<96xf32>
    %5 = vector.shape_cast %4 : vector<96xf32> to vector<1x96xf32>
    %6 = vector.broadcast %5 : vector<1x96xf32> to vector<32x96xf32>
    %7 = arith.addf %2, %6 : vector<32x96xf32>
    %c0_5 = arith.constant 0 : index
    %c0_6 = arith.constant 0 : index
    %8 = vector.load %arg4[%c0_5, %c0_6] : memref<32x32xf32, #tpu.memory_space<vmem>>, vector<32x32xf32>
    %c0_7 = arith.constant 0 : index
    %c0_8 = arith.constant 0 : index
    %9 = vector.load %arg5[%c0_7, %c0_8] : memref<1x32xf32, #tpu.memory_space<vmem>>, vector<1x32xf32>
    %10 = vector.shape_cast %9 : vector<1x32xf32> to vector<32xf32>
    %11 = vector.extract_strided_slice %7 {offsets = [0, 0], sizes = [16, 8], strides = [1, 1]} : vector<32x96xf32> to vector<16x8xf32>
    %12 = vector.extract_strided_slice %7 {offsets = [0, 32], sizes = [16, 8], strides = [1, 1]} : vector<32x96xf32> to vector<16x8xf32>
    %13 = vector.extract_strided_slice %7 {offsets = [0, 64], sizes = [16, 8], strides = [1, 1]} : vector<32x96xf32> to vector<16x8xf32>
    %cst_9 = arith.constant dense<0.000000e+00> : vector<16x16xf32>
    %14 = tpu.matmul %11, %12, %cst_9 {dimension_numbers = #tpu.dot_dimension_numbers<[1], [1], [0], [0], [0, 0, 1, 0], [], []>} : vector<16x8xf32>, vector<16x8xf32>, vector<16x16xf32> -> vector<16x16xf32>
    %cst_10 = arith.constant dense<0xFF800000> : vector<16xf32>
    %15 = vector.multi_reduction <maximumf>, %14, %cst_10 [1] : vector<16x16xf32> to vector<16xf32>
    %16 = vector.shape_cast %15 : vector<16xf32> to vector<16x1xf32>
    %17 = vector.broadcast %16 : vector<16x1xf32> to vector<16x16xf32>
    %18 = arith.subf %14, %17 : vector<16x16xf32>
    %19 = math.exp %18 : vector<16x16xf32>
    %cst_11 = arith.constant dense<0.000000e+00> : vector<16xf32>
    %20 = vector.multi_reduction <add>, %19, %cst_11 [1] : vector<16x16xf32> to vector<16xf32>
    %21 = vector.shape_cast %20 : vector<16xf32> to vector<16x1xf32>
    %22 = tpu.reciprocal %21 : vector<16x1xf32> -> vector<16x1xf32>
    %23 = vector.broadcast %22 : vector<16x1xf32> to vector<16x16xf32>
    %24 = arith.mulf %19, %23 : vector<16x16xf32>
    %cst_12 = arith.constant dense<0.000000e+00> : vector<16x8xf32>
    %25 = tpu.matmul %24, %13, %cst_12 {dimension_numbers = #tpu.dot_dimension_numbers<[1], [0], [0], [1], [0, 0, 1, 1], [], []>} : vector<16x16xf32>, vector<16x8xf32>, vector<16x8xf32> -> vector<16x8xf32>
    %26 = vector.extract_strided_slice %8 {offsets = [0, 0], sizes = [8, 32], strides = [1, 1]} : vector<32x32xf32> to vector<8x32xf32>
    %cst_13 = arith.constant dense<0.000000e+00> : vector<16x32xf32>
    %27 = tpu.matmul %25, %26, %cst_13 {dimension_numbers = #tpu.dot_dimension_numbers<[1], [0], [0], [1], [0, 0, 1, 1], [], []>} : vector<16x8xf32>, vector<8x32xf32>, vector<16x32xf32> -> vector<16x32xf32>
    %28 = vector.extract_strided_slice %7 {offsets = [0, 8], sizes = [16, 8], strides = [1, 1]} : vector<32x96xf32> to vector<16x8xf32>
    %29 = vector.extract_strided_slice %7 {offsets = [0, 40], sizes = [16, 8], strides = [1, 1]} : vector<32x96xf32> to vector<16x8xf32>
    %30 = vector.extract_strided_slice %7 {offsets = [0, 72], sizes = [16, 8], strides = [1, 1]} : vector<32x96xf32> to vector<16x8xf32>
    %cst_14 = arith.constant dense<0.000000e+00> : vector<16x16xf32>
    %31 = tpu.matmul %28, %29, %cst_14 {dimension_numbers = #tpu.dot_dimension_numbers<[1], [1], [0], [0], [0, 0, 1, 0], [], []>} : vector<16x8xf32>, vector<16x8xf32>, vector<16x16xf32> -> vector<16x16xf32>
    %cst_15 = arith.constant dense<0xFF800000> : vector<16xf32>
    %32 = vector.multi_reduction <maximumf>, %31, %cst_15 [1] : vector<16x16xf32> to vector<16xf32>
    %33 = vector.shape_cast %32 : vector<16xf32> to vector<16x1xf32>
    %34 = vector.broadcast %33 : vector<16x1xf32> to vector<16x16xf32>
    %35 = arith.subf %31, %34 : vector<16x16xf32>
    %36 = math.exp %35 : vector<16x16xf32>
    %cst_16 = arith.constant dense<0.000000e+00> : vector<16xf32>
    %37 = vector.multi_reduction <add>, %36, %cst_16 [1] : vector<16x16xf32> to vector<16xf32>
    %38 = vector.shape_cast %37 : vector<16xf32> to vector<16x1xf32>
    %39 = tpu.reciprocal %38 : vector<16x1xf32> -> vector<16x1xf32>
    %40 = vector.broadcast %39 : vector<16x1xf32> to vector<16x16xf32>
    %41 = arith.mulf %36, %40 : vector<16x16xf32>
    %cst_17 = arith.constant dense<0.000000e+00> : vector<16x8xf32>
    %42 = tpu.matmul %41, %30, %cst_17 {dimension_numbers = #tpu.dot_dimension_numbers<[1], [0], [0], [1], [0, 0, 1, 1], [], []>} : vector<16x16xf32>, vector<16x8xf32>, vector<16x8xf32> -> vector<16x8xf32>
    %43 = vector.extract_strided_slice %8 {offsets = [8, 0], sizes = [8, 32], strides = [1, 1]} : vector<32x32xf32> to vector<8x32xf32>
    %cst_18 = arith.constant dense<0.000000e+00> : vector<16x32xf32>
    %44 = tpu.matmul %42, %43, %cst_18 {dimension_numbers = #tpu.dot_dimension_numbers<[1], [0], [0], [1], [0, 0, 1, 1], [], []>} : vector<16x8xf32>, vector<8x32xf32>, vector<16x32xf32> -> vector<16x32xf32>
    %45 = arith.addf %27, %44 : vector<16x32xf32>
    %46 = vector.extract_strided_slice %7 {offsets = [0, 16], sizes = [16, 8], strides = [1, 1]} : vector<32x96xf32> to vector<16x8xf32>
    %47 = vector.extract_strided_slice %7 {offsets = [0, 48], sizes = [16, 8], strides = [1, 1]} : vector<32x96xf32> to vector<16x8xf32>
    %48 = vector.extract_strided_slice %7 {offsets = [0, 80], sizes = [16, 8], strides = [1, 1]} : vector<32x96xf32> to vector<16x8xf32>
    %cst_19 = arith.constant dense<0.000000e+00> : vector<16x16xf32>
    %49 = tpu.matmul %46, %47, %cst_19 {dimension_numbers = #tpu.dot_dimension_numbers<[1], [1], [0], [0], [0, 0, 1, 0], [], []>} : vector<16x8xf32>, vector<16x8xf32>, vector<16x16xf32> -> vector<16x16xf32>
    %cst_20 = arith.constant dense<0xFF800000> : vector<16xf32>
    %50 = vector.multi_reduction <maximumf>, %49, %cst_20 [1] : vector<16x16xf32> to vector<16xf32>
    %51 = vector.shape_cast %50 : vector<16xf32> to vector<16x1xf32>
    %52 = vector.broadcast %51 : vector<16x1xf32> to vector<16x16xf32>
    %53 = arith.subf %49, %52 : vector<16x16xf32>
    %54 = math.exp %53 : vector<16x16xf32>
    %cst_21 = arith.constant dense<0.000000e+00> : vector<16xf32>
    %55 = vector.multi_reduction <add>, %54, %cst_21 [1] : vector<16x16xf32> to vector<16xf32>
    %56 = vector.shape_cast %55 : vector<16xf32> to vector<16x1xf32>
    %57 = tpu.reciprocal %56 : vector<16x1xf32> -> vector<16x1xf32>
    %58 = vector.broadcast %57 : vector<16x1xf32> to vector<16x16xf32>
    %59 = arith.mulf %54, %58 : vector<16x16xf32>
    %cst_22 = arith.constant dense<0.000000e+00> : vector<16x8xf32>
    %60 = tpu.matmul %59, %48, %cst_22 {dimension_numbers = #tpu.dot_dimension_numbers<[1], [0], [0], [1], [0, 0, 1, 1], [], []>} : vector<16x16xf32>, vector<16x8xf32>, vector<16x8xf32> -> vector<16x8xf32>
    %61 = vector.extract_strided_slice %8 {offsets = [16, 0], sizes = [8, 32], strides = [1, 1]} : vector<32x32xf32> to vector<8x32xf32>
    %cst_23 = arith.constant dense<0.000000e+00> : vector<16x32xf32>
    %62 = tpu.matmul %60, %61, %cst_23 {dimension_numbers = #tpu.dot_dimension_numbers<[1], [0], [0], [1], [0, 0, 1, 1], [], []>} : vector<16x8xf32>, vector<8x32xf32>, vector<16x32xf32> -> vector<16x32xf32>
    %63 = arith.addf %45, %62 : vector<16x32xf32>
    %64 = vector.extract_strided_slice %7 {offsets = [0, 24], sizes = [16, 8], strides = [1, 1]} : vector<32x96xf32> to vector<16x8xf32>
    %65 = vector.extract_strided_slice %7 {offsets = [0, 56], sizes = [16, 8], strides = [1, 1]} : vector<32x96xf32> to vector<16x8xf32>
    %66 = vector.extract_strided_slice %7 {offsets = [0, 88], sizes = [16, 8], strides = [1, 1]} : vector<32x96xf32> to vector<16x8xf32>
    %cst_24 = arith.constant dense<0.000000e+00> : vector<16x16xf32>
    %67 = tpu.matmul %64, %65, %cst_24 {dimension_numbers = #tpu.dot_dimension_numbers<[1], [1], [0], [0], [0, 0, 1, 0], [], []>} : vector<16x8xf32>, vector<16x8xf32>, vector<16x16xf32> -> vector<16x16xf32>
    %cst_25 = arith.constant dense<0xFF800000> : vector<16xf32>
    %68 = vector.multi_reduction <maximumf>, %67, %cst_25 [1] : vector<16x16xf32> to vector<16xf32>
    %69 = vector.shape_cast %68 : vector<16xf32> to vector<16x1xf32>
    %70 = vector.broadcast %69 : vector<16x1xf32> to vector<16x16xf32>
    %71 = arith.subf %67, %70 : vector<16x16xf32>
    %72 = math.exp %71 : vector<16x16xf32>
    %cst_26 = arith.constant dense<0.000000e+00> : vector<16xf32>
    %73 = vector.multi_reduction <add>, %72, %cst_26 [1] : vector<16x16xf32> to vector<16xf32>
    %74 = vector.shape_cast %73 : vector<16xf32> to vector<16x1xf32>
    %75 = tpu.reciprocal %74 : vector<16x1xf32> -> vector<16x1xf32>
    %76 = vector.broadcast %75 : vector<16x1xf32> to vector<16x16xf32>
    %77 = arith.mulf %72, %76 : vector<16x16xf32>
    %cst_27 = arith.constant dense<0.000000e+00> : vector<16x8xf32>
    %78 = tpu.matmul %77, %66, %cst_27 {dimension_numbers = #tpu.dot_dimension_numbers<[1], [0], [0], [1], [0, 0, 1, 1], [], []>} : vector<16x16xf32>, vector<16x8xf32>, vector<16x8xf32> -> vector<16x8xf32>
    %79 = vector.extract_strided_slice %8 {offsets = [24, 0], sizes = [8, 32], strides = [1, 1]} : vector<32x32xf32> to vector<8x32xf32>
    %cst_28 = arith.constant dense<0.000000e+00> : vector<16x32xf32>
    %80 = tpu.matmul %78, %79, %cst_28 {dimension_numbers = #tpu.dot_dimension_numbers<[1], [0], [0], [1], [0, 0, 1, 1], [], []>} : vector<16x8xf32>, vector<8x32xf32>, vector<16x32xf32> -> vector<16x32xf32>
    %81 = arith.addf %63, %80 : vector<16x32xf32>
    %82 = vector.shape_cast %10 : vector<32xf32> to vector<1x32xf32>
    %83 = vector.broadcast %82 : vector<1x32xf32> to vector<16x32xf32>
    %84 = arith.addf %81, %83 : vector<16x32xf32>
    %c0_29 = arith.constant 0 : index
    %c0_30 = arith.constant 0 : index
    %85 = vector.load %arg6[%c0_29, %c0_30] : memref<32x32xf32, #tpu.memory_space<vmem>>, vector<16x32xf32>
    tpu.vector_store %arg6[%c0_29, %c0_30], %84 {strides = array<i32>} : memref<32x32xf32, #tpu.memory_space<vmem>>, vector<16x32xf32>,
    %86 = vector.extract_strided_slice %7 {offsets = [16, 0], sizes = [16, 8], strides = [1, 1]} : vector<32x96xf32> to vector<16x8xf32>
    %87 = vector.extract_strided_slice %7 {offsets = [16, 32], sizes = [16, 8], strides = [1, 1]} : vector<32x96xf32> to vector<16x8xf32>
    %88 = vector.extract_strided_slice %7 {offsets = [16, 64], sizes = [16, 8], strides = [1, 1]} : vector<32x96xf32> to vector<16x8xf32>
    %cst_31 = arith.constant dense<0.000000e+00> : vector<16x16xf32>
    %89 = tpu.matmul %86, %87, %cst_31 {dimension_numbers = #tpu.dot_dimension_numbers<[1], [1], [0], [0], [0, 0, 1, 0], [], []>} : vector<16x8xf32>, vector<16x8xf32>, vector<16x16xf32> -> vector<16x16xf32>
    %cst_32 = arith.constant dense<0xFF800000> : vector<16xf32>
    %90 = vector.multi_reduction <maximumf>, %89, %cst_32 [1] : vector<16x16xf32> to vector<16xf32>
    %91 = vector.shape_cast %90 : vector<16xf32> to vector<16x1xf32>
    %92 = vector.broadcast %91 : vector<16x1xf32> to vector<16x16xf32>
    %93 = arith.subf %89, %92 : vector<16x16xf32>
    %94 = math.exp %93 : vector<16x16xf32>
    %cst_33 = arith.constant dense<0.000000e+00> : vector<16xf32>
    %95 = vector.multi_reduction <add>, %94, %cst_33 [1] : vector<16x16xf32> to vector<16xf32>
    %96 = vector.shape_cast %95 : vector<16xf32> to vector<16x1xf32>
    %97 = tpu.reciprocal %96 : vector<16x1xf32> -> vector<16x1xf32>
    %98 = vector.broadcast %97 : vector<16x1xf32> to vector<16x16xf32>
    %99 = arith.mulf %94, %98 : vector<16x16xf32>
    %cst_34 = arith.constant dense<0.000000e+00> : vector<16x8xf32>
    %100 = tpu.matmul %99, %88, %cst_34 {dimension_numbers = #tpu.dot_dimension_numbers<[1], [0], [0], [1], [0, 0, 1, 1], [], []>} : vector<16x16xf32>, vector<16x8xf32>, vector<16x8xf32> -> vector<16x8xf32>
    %101 = vector.extract_strided_slice %8 {offsets = [0, 0], sizes = [8, 32], strides = [1, 1]} : vector<32x32xf32> to vector<8x32xf32>
    %cst_35 = arith.constant dense<0.000000e+00> : vector<16x32xf32>
    %102 = tpu.matmul %100, %101, %cst_35 {dimension_numbers = #tpu.dot_dimension_numbers<[1], [0], [0], [1], [0, 0, 1, 1], [], []>} : vector<16x8xf32>, vector<8x32xf32>, vector<16x32xf32> -> vector<16x32xf32>
    %103 = vector.extract_strided_slice %7 {offsets = [16, 8], sizes = [16, 8], strides = [1, 1]} : vector<32x96xf32> to vector<16x8xf32>
    %104 = vector.extract_strided_slice %7 {offsets = [16, 40], sizes = [16, 8], strides = [1, 1]} : vector<32x96xf32> to vector<16x8xf32>
    %105 = vector.extract_strided_slice %7 {offsets = [16, 72], sizes = [16, 8], strides = [1, 1]} : vector<32x96xf32> to vector<16x8xf32>
    %cst_36 = arith.constant dense<0.000000e+00> : vector<16x16xf32>
    %106 = tpu.matmul %103, %104, %cst_36 {dimension_numbers = #tpu.dot_dimension_numbers<[1], [1], [0], [0], [0, 0, 1, 0], [], []>} : vector<16x8xf32>, vector<16x8xf32>, vector<16x16xf32> -> vector<16x16xf32>
    %cst_37 = arith.constant dense<0xFF800000> : vector<16xf32>
    %107 = vector.multi_reduction <maximumf>, %106, %cst_37 [1] : vector<16x16xf32> to vector<16xf32>
    %108 = vector.shape_cast %107 : vector<16xf32> to vector<16x1xf32>
    %109 = vector.broadcast %108 : vector<16x1xf32> to vector<16x16xf32>
    %110 = arith.subf %106, %109 : vector<16x16xf32>
    %111 = math.exp %110 : vector<16x16xf32>
    %cst_38 = arith.constant dense<0.000000e+00> : vector<16xf32>
    %112 = vector.multi_reduction <add>, %111, %cst_38 [1] : vector<16x16xf32> to vector<16xf32>
    %113 = vector.shape_cast %112 : vector<16xf32> to vector<16x1xf32>
    %114 = tpu.reciprocal %113 : vector<16x1xf32> -> vector<16x1xf32>
    %115 = vector.broadcast %114 : vector<16x1xf32> to vector<16x16xf32>
    %116 = arith.mulf %111, %115 : vector<16x16xf32>
    %cst_39 = arith.constant dense<0.000000e+00> : vector<16x8xf32>
    %117 = tpu.matmul %116, %105, %cst_39 {dimension_numbers = #tpu.dot_dimension_numbers<[1], [0], [0], [1], [0, 0, 1, 1], [], []>} : vector<16x16xf32>, vector<16x8xf32>, vector<16x8xf32> -> vector<16x8xf32>
    %118 = vector.extract_strided_slice %8 {offsets = [8, 0], sizes = [8, 32], strides = [1, 1]} : vector<32x32xf32> to vector<8x32xf32>
    %cst_40 = arith.constant dense<0.000000e+00> : vector<16x32xf32>
    %119 = tpu.matmul %117, %118, %cst_40 {dimension_numbers = #tpu.dot_dimension_numbers<[1], [0], [0], [1], [0, 0, 1, 1], [], []>} : vector<16x8xf32>, vector<8x32xf32>, vector<16x32xf32> -> vector<16x32xf32>
    %120 = arith.addf %102, %119 : vector<16x32xf32>
    %121 = vector.extract_strided_slice %7 {offsets = [16, 16], sizes = [16, 8], strides = [1, 1]} : vector<32x96xf32> to vector<16x8xf32>
    %122 = vector.extract_strided_slice %7 {offsets = [16, 48], sizes = [16, 8], strides = [1, 1]} : vector<32x96xf32> to vector<16x8xf32>
    %123 = vector.extract_strided_slice %7 {offsets = [16, 80], sizes = [16, 8], strides = [1, 1]} : vector<32x96xf32> to vector<16x8xf32>
    %cst_41 = arith.constant dense<0.000000e+00> : vector<16x16xf32>
    %124 = tpu.matmul %121, %122, %cst_41 {dimension_numbers = #tpu.dot_dimension_numbers<[1], [1], [0], [0], [0, 0, 1, 0], [], []>} : vector<16x8xf32>, vector<16x8xf32>, vector<16x16xf32> -> vector<16x16xf32>
    %cst_42 = arith.constant dense<0xFF800000> : vector<16xf32>
    %125 = vector.multi_reduction <maximumf>, %124, %cst_42 [1] : vector<16x16xf32> to vector<16xf32>
    %126 = vector.shape_cast %125 : vector<16xf32> to vector<16x1xf32>
    %127 = vector.broadcast %126 : vector<16x1xf32> to vector<16x16xf32>
    %128 = arith.subf %124, %127 : vector<16x16xf32>
    %129 = math.exp %128 : vector<16x16xf32>
    %cst_43 = arith.constant dense<0.000000e+00> : vector<16xf32>
    %130 = vector.multi_reduction <add>, %129, %cst_43 [1] : vector<16x16xf32> to vector<16xf32>
    %131 = vector.shape_cast %130 : vector<16xf32> to vector<16x1xf32>
    %132 = tpu.reciprocal %131 : vector<16x1xf32> -> vector<16x1xf32>
    %133 = vector.broadcast %132 : vector<16x1xf32> to vector<16x16xf32>
    %134 = arith.mulf %129, %133 : vector<16x16xf32>
    %cst_44 = arith.constant dense<0.000000e+00> : vector<16x8xf32>
    %135 = tpu.matmul %134, %123, %cst_44 {dimension_numbers = #tpu.dot_dimension_numbers<[1], [0], [0], [1], [0, 0, 1, 1], [], []>} : vector<16x16xf32>, vector<16x8xf32>, vector<16x8xf32> -> vector<16x8xf32>
    %136 = vector.extract_strided_slice %8 {offsets = [16, 0], sizes = [8, 32], strides = [1, 1]} : vector<32x32xf32> to vector<8x32xf32>
    %cst_45 = arith.constant dense<0.000000e+00> : vector<16x32xf32>
    %137 = tpu.matmul %135, %136, %cst_45 {dimension_numbers = #tpu.dot_dimension_numbers<[1], [0], [0], [1], [0, 0, 1, 1], [], []>} : vector<16x8xf32>, vector<8x32xf32>, vector<16x32xf32> -> vector<16x32xf32>
    %138 = arith.addf %120, %137 : vector<16x32xf32>
    %139 = vector.extract_strided_slice %7 {offsets = [16, 24], sizes = [16, 8], strides = [1, 1]} : vector<32x96xf32> to vector<16x8xf32>
    %140 = vector.extract_strided_slice %7 {offsets = [16, 56], sizes = [16, 8], strides = [1, 1]} : vector<32x96xf32> to vector<16x8xf32>
    %141 = vector.extract_strided_slice %7 {offsets = [16, 88], sizes = [16, 8], strides = [1, 1]} : vector<32x96xf32> to vector<16x8xf32>
    %cst_46 = arith.constant dense<0.000000e+00> : vector<16x16xf32>
    %142 = tpu.matmul %139, %140, %cst_46 {dimension_numbers = #tpu.dot_dimension_numbers<[1], [1], [0], [0], [0, 0, 1, 0], [], []>} : vector<16x8xf32>, vector<16x8xf32>, vector<16x16xf32> -> vector<16x16xf32>
    %cst_47 = arith.constant dense<0xFF800000> : vector<16xf32>
    %143 = vector.multi_reduction <maximumf>, %142, %cst_47 [1] : vector<16x16xf32> to vector<16xf32>
    %144 = vector.shape_cast %143 : vector<16xf32> to vector<16x1xf32>
    %145 = vector.broadcast %144 : vector<16x1xf32> to vector<16x16xf32>
    %146 = arith.subf %142, %145 : vector<16x16xf32>
    %147 = math.exp %146 : vector<16x16xf32>
    %cst_48 = arith.constant dense<0.000000e+00> : vector<16xf32>
    %148 = vector.multi_reduction <add>, %147, %cst_48 [1] : vector<16x16xf32> to vector<16xf32>
    %149 = vector.shape_cast %148 : vector<16xf32> to vector<16x1xf32>
    %150 = tpu.reciprocal %149 : vector<16x1xf32> -> vector<16x1xf32>
    %151 = vector.broadcast %150 : vector<16x1xf32> to vector<16x16xf32>
    %152 = arith.mulf %147, %151 : vector<16x16xf32>
    %cst_49 = arith.constant dense<0.000000e+00> : vector<16x8xf32>
    %153 = tpu.matmul %152, %141, %cst_49 {dimension_numbers = #tpu.dot_dimension_numbers<[1], [0], [0], [1], [0, 0, 1, 1], [], []>} : vector<16x16xf32>, vector<16x8xf32>, vector<16x8xf32> -> vector<16x8xf32>
    %154 = vector.extract_strided_slice %8 {offsets = [24, 0], sizes = [8, 32], strides = [1, 1]} : vector<32x32xf32> to vector<8x32xf32>
    %cst_50 = arith.constant dense<0.000000e+00> : vector<16x32xf32>
    %155 = tpu.matmul %153, %154, %cst_50 {dimension_numbers = #tpu.dot_dimension_numbers<[1], [0], [0], [1], [0, 0, 1, 1], [], []>} : vector<16x8xf32>, vector<8x32xf32>, vector<16x32xf32> -> vector<16x32xf32>
    %156 = arith.addf %138, %155 : vector<16x32xf32>
    %157 = vector.shape_cast %10 : vector<32xf32> to vector<1x32xf32>
    %158 = vector.broadcast %157 : vector<1x32xf32> to vector<16x32xf32>
    %159 = arith.addf %156, %158 : vector<16x32xf32>
    %c16 = arith.constant 16 : index
    %c0_51 = arith.constant 0 : index
    %160 = vector.load %arg6[%c16, %c0_51] : memref<32x32xf32, #tpu.memory_space<vmem>>, vector<16x32xf32>
    tpu.vector_store %arg6[%c16, %c0_51], %159 {strides = array<i32>} : memref<32x32xf32, #tpu.memory_space<vmem>>, vector<16x32xf32>,
    return
  }
  func.func @transform_0(%arg0: i32) -> (i32, i32) {
    %c0_i32 = arith.constant 0 : i32
    %c0_i32_0 = arith.constant 0 : i32
    %c0_i32_1 = arith.constant 0 : i32
    return %c0_i32, %c0_i32_0 : i32, i32
  }
  func.func @transform_1(%arg0: i32) -> (i32, i32) {
    %c0_i32 = arith.constant 0 : i32
    %c0_i32_0 = arith.constant 0 : i32
    %c0_i32_1 = arith.constant 0 : i32
    return %c0_i32, %c0_i32_0 : i32, i32
  }
  func.func @transform_2(%arg0: i32) -> (i32, i32) {
    %c0_i32 = arith.constant 0 : i32
    %c0_i32_0 = arith.constant 0 : i32
    %c0_i32_1 = arith.constant 0 : i32
    return %c0_i32, %c0_i32_0 : i32, i32
  }
  func.func @transform_3(%arg0: i32) -> (i32, i32) {
    %c0_i32 = arith.constant 0 : i32
    %c0_i32_0 = arith.constant 0 : i32
    %c0_i32_1 = arith.constant 0 : i32
    return %c0_i32, %c0_i32_0 : i32, i32
  }
  func.func @transform_4(%arg0: i32) -> (i32, i32) {
    %c0_i32 = arith.constant 0 : i32
    %c0_i32_0 = arith.constant 0 : i32
    %c0_i32_1 = arith.constant 0 : i32
    return %c0_i32, %c0_i32_0 : i32, i32
  }
  func.func @transform_5(%arg0: i32) -> (i32, i32) {
    %c0_i32 = arith.constant 0 : i32
    %c0_i32_0 = arith.constant 0 : i32
    %c0_i32_1 = arith.constant 0 : i32
    return %c0_i32, %c0_i32_0 : i32, i32
  }
}

</mosaic_0001>

<bundles_post_ra>
// kernel: tpu_custom_call.1
= control target key start
LH: loop header
LB: loop body
LE: loop exit
PB: predicated region body
PF: predicated region fallthrough
CT: control target
= control target key end

     0   :  { %10 = vsyncpa [#allocation3], 0  ;;  %s3531_s0 = inlined_call_operand.hbm [shape: f32[32,32], index: 0, kind: input, shape index: {}]   ;;  %s3532_s1 = inlined_call_operand.hbm [shape: f32[32,96], index: 1, kind: input, shape index: {}]   ;;  %s3533_s2 = inlined_call_operand.vmem [shape: f32[1,96], index: 2, kind: input, shape index: {}]   ;;  %s3534_s3 = inlined_call_operand.hbm [shape: f32[32,32], index: 3, kind: input, shape index: {}]   ;;  %s3535_s4 = inlined_call_operand.vmem [shape: f32[1,32], index: 4, kind: input, shape index: {}]   ;;  %s3536_s5 = inlined_call_operand.hbm [shape: f32[32,32], index: 5, kind: output, shape index: {}]  }
   0x1   :  { %11 = vsyncpa [#allocation6], 0 }
   0x2   :  { %12 = vsyncpa [#allocation4], 0  ;;  %s3153_s18 = smov [#allocation5]   ;;  %s3154_s20 = smov [#allocation2]  }
   0x3   :  { %s30_s19 = sshll.u32 %s3153_s18, 4  ;;  %s18_s21 = sshll.u32 %s3154_s20, 4  ;;  %s31_s19 = int_to_ptr.vmem [resolvable:$true] %s30_s19  ;;  %s3200_s21 = int_to_ptr.vmem [resolvable:$true] %s18_s21 }
   0x4   :  { %s3059_s24 = scalar_lea.hbm %s3532_s1, 512 }
   0x5   :  { %p3060_p0 = scmp.ne.s32.totalorder %s3532_s1, %s3059_s24  ;;  %p3063_p1 = scmp.lt.u32.totalorder %s3059_s24, %s3532_s1 }
   0x7   :  { %p3065_p2 = pnand %p3063_p1, %p3060_p0 }
   0x9   :  { %3068 = shalt.err (!%p3065_p2)
}
   0xa   :  { %s3069_s29 = scalar_lea.vmem %s31_s19, 512  ;;  %p3074_p4 = scmp.lt.s32.totalorder %s31_s19, %s31_s19 }
   0xb   :  { %p3070_p3 = scmp.ne.s32.totalorder %s31_s19, %s3069_s29  ;;  %p3075_p5 = scmp.lt.s32.totalorder %s3069_s29, %s3069_s29 }
   0xd   :  { %p3076_p6 = por %p3075_p5, %p3074_p4 }
   0xf   :  { %p3077_p7 = pnand %p3076_p6, %p3070_p3 }
  0x11   :  { %3080 = shalt.err (!%p3077_p7)
}
  0x12   :  { %s3155_s30 = smov 128   ;;  %s3156_s6 = smov 8  }
  0x13   :  { %36 = dma.hbm_to_vmem [thread:$0]  %s3532_s1, 512, %s31_s19, [#allocation6], %s3155_s30, %s3155_s30, %s3156_s6  }
  0x14   :  { %s3081_s11 = scalar_lea.hbm %s3531_s0, 512 }
  0x15   :  { %p3082_p8 = scmp.ne.s32.totalorder %s3531_s0, %s3081_s11  ;;  %p3085_p9 = scmp.lt.u32.totalorder %s3081_s11, %s3531_s0 }
  0x17   :  { %p3087_p10 = pnand %p3085_p9, %p3082_p8 }
  0x19   :  { %3090 = shalt.err (!%p3087_p10)
}
  0x1a   :  { %s3091_s16 = scalar_lea.vmem %s3200_s21, 512  ;;  %p3096_p12 = scmp.lt.s32.totalorder %s3200_s21, %s3200_s21 }
  0x1b   :  { %p3092_p11 = scmp.ne.s32.totalorder %s3200_s21, %s3091_s16  ;;  %p3097_p13 = scmp.lt.s32.totalorder %s3091_s16, %s3091_s16 }
  0x1d   :  { %p3098_p0 = por %p3097_p13, %p3096_p12 }
  0x1f   :  { %p3099_p1 = pnand %p3098_p0, %p3092_p11 }
  0x21   :  { %3102 = shalt.err (!%p3099_p1)
}
  0x22   :  { %24 = dma.hbm_to_vmem [thread:$0]  %s3531_s0, 512, %s3200_s21, [#allocation3], %s3155_s30, %s3155_s30, %s3156_s6  }
  0x23   :  { %s3157_s18 = smov [#allocation7]   ;;  %s3103_s23 = scalar_lea.hbm %s3534_s3, 512 }
  0x24   :  { %s44_s19 = sshll.u32 %s3157_s18, 4  ;;  %p3104_p2 = scmp.ne.s32.totalorder %s3534_s3, %s3103_s23  ;;  %s45_s19 = int_to_ptr.vmem [resolvable:$true] %s44_s19 }
  0x25   :  { %p3107_p3 = scmp.lt.u32.totalorder %s3103_s23, %s3534_s3 }
  0x27   :  { %p3109_p4 = pnand %p3107_p3, %p3104_p2 }
  0x29   :  { %3112 = shalt.err (!%p3109_p4)
}
  0x2a   :  { %s3113_s28 = scalar_lea.vmem %s45_s19, 512  ;;  %p3118_p6 = scmp.lt.s32.totalorder %s45_s19, %s45_s19 }
  0x2b   :  { %p3114_p5 = scmp.ne.s32.totalorder %s45_s19, %s3113_s28  ;;  %p3119_p7 = scmp.lt.s32.totalorder %s3113_s28, %s3113_s28 }
  0x2d   :  { %p3120_p8 = por %p3119_p7, %p3118_p6 }
  0x2f   :  { %p3121_p9 = pnand %p3120_p8, %p3114_p5 }
  0x31   :  { %3124 = shalt.err (!%p3121_p9)
}
  0x32   :  { %50 = dma.hbm_to_vmem [thread:$0]  %s3534_s3, 512, %s45_s19, [#allocation6], %s3155_s30, %s3155_s30, %s3156_s6  }
  0x33   :  { %3147 = dma.done.wait [#allocation3], 512  }
  0x34   :  { %3148 = vsyncadd [#allocation3], 4294966784 }
  0x35   :  { %3149 = dma.done.wait [#allocation6], 1024  }
  0x36   :  { %3150 = vsyncadd [#allocation6], 4294966272  ;;  %vm77_vm0 = vcmask 261120   ;;  %v66_v0 = vld [vmem:[#allocation5] sm:$0xff]  ;;  %v67_v1 = vld [vmem:[#allocation5 + $0x8] sm:$0xff]  ;;  %vm186_vm1 = vcmask 64512  }
  0x37   :  { %v68_v2 = vld [vmem:[#allocation5 + $0x10] sm:$0xff]  ;;  %v2798_v3 = vpack.c.bf16 %v67_v1, %v66_v0  ;;  %v69_v4 = vld [vmem:[#allocation5 + $0x18] sm:$0xff]  ;;  %v62_v5 = vld [vmem:[#allocation2] sm:$0xff]  ;;  %s3158_s7 = smov 120   ;;  %s3160_s8 = smov 88   ;;  %vm270_vm3 = vcmask 130048  }
  0x38   :  { %v2802_v6 = vpack.c.bf16 %v69_v4, %v68_v2  ;;  %2640 = vmatprep.mubr.msk.f32.mxu0 %vm77_vm0, %v62_v5  ;;  %v63_v7 = vld [vmem:[#allocation2 + $0x8] sm:$0xff]  ;;  %v64_v8 = vld [vmem:[#allocation2 + $0x10] sm:$0xff]  ;;  %v65_v9 = vld [vmem:[#allocation2 + $0x18] sm:$0xff]  ;;  %s3161_s9 = smov 64   ;;  %s3162_s10 = smov 80  }
  0x39   :  { %2799 = vmatprep.subr.bf16.mxu0 %v2798_v3  ;;  %v3259_v10 = vld [vmem:[%s3533_s2] ss:$0 sm:$0xff]  ;;  %s3159_s2 = smov 96   ;;  %vm3286_vm2 = vmpackc.low %vm186_vm1, %vm186_vm1  ;;  %s3163_s11 = smov 112  }
  0x3a   :  { %2801 = vmatpush3.bf16.msra.mxu0 %v2798_v3  ;;  %s3164_s12 = smov 56   ;;  %s3165_s13 = smov 72  }
  0x3b   :  { %2803 = vmatprep.subr.bf16.mxu0 %v2802_v6  ;;  %s3166_s14 = smov 104   ;;  %s3167_s15 = smov 48  }
  0x3c   :  { %s3168_s16 = smov 40  }
  0x3e   :  { %2805 = vmatpush3.bf16.msra.mxu0 %v2802_v6 }
  0x41   :  { %2641 = vmatmul.mubr.msk.f32.vlgmr.msra.gmra.mrb[0].mxu0 %vm77_vm0, %v63_v7 }
  0x42   :  { %2643 = vmatprep.mubr.msk.f32.mxu0 %vm77_vm0, %v64_v8 }
  0x45   :  { %2644 = vmatmul.mubr.msk.f32.gmra.mrb[2].mxu0 %vm77_vm0, %v65_v9 }
 0x114   :  { %v2642_v11 = vpop.f32.mrb[0].mxu0 }
 0x115   :  { %v3262_v12 = vadd.f32 %v2642_v11, %v3259_v10  ;;  %v156_v13 = vpop.f32.mrb[1].mxu0 }
 0x116   :  { %v3265_v14 = vadd.f32 %v3259_v10, %v156_v13  ;;  %v3328_v13 = vld [vmem:[#allocation7 + $0x8] sm:$0xff] }
 0x118   :  { %380 = vrot.lane.b32.xlu1 %v3265_v14, %s3158_s7  ;;  %2650 = vmatprep.mubr.msk.f32.mxu1 %vm186_vm1, %v3265_v14  ;;  %v3273_v15 = vpack.i.bf16 %v3262_v12, %v3265_v14  ;;  %v3281_v16 = vpop.f32.mrb[2].mxu0 }
 0x119   :  { %v3301_v28 = vpop.f32.mrb[3].mxu0 }
 0x11a   :  { %2916 = vrot.lane.b32.xlu0 %v3273_v15, %s3159_s2 }
 0x11c   :  { %382 = vrot.lane.b32.xlu1 %v3262_v12, %s3158_s7 }
 0x11e   :  { %2921 = vrot.lane.b32.xlu0 %v3273_v15, %s3160_s8 }
 0x18a   :  { %v381_v17 = vpop.permute.xlu1 %380 }
 0x18b   :  { %2664 = vmatprep.mubr.msk.f32.mxu0 %vm186_vm1, %v381_v17 }
 0x18c   :  { %v2917_v18 = vpop.permute.xlu0 %2916 }
 0x18d   :  { %v2919_v19 = vunpack.i.h.bf16 %v2917_v18  ;;  %v2918_v20 = vunpack.i.l.bf16 %v2917_v18 }
 0x18e   :  { %v383_v27 = vpop.permute.xlu1 %382 }
 0x18f   :  { %v2806_v22 = vpack.c.bf16 %v2919_v19, %v2918_v20 }
 0x190   :  { %v2922_v23 = vpop.permute.xlu0 %2921 }
 0x191   :  { %v2924_v24 = vunpack.i.h.bf16 %v2922_v23  ;;  %v2923_v25 = vunpack.i.l.bf16 %v2922_v23  ;;  %2808 = vmatprep.subr.msk.bf16.mxu1 %vm3286_vm2, %v2806_v22 }
 0x192   :  { %2811 = vmatpush3.bf16.xpose.msk.msra.mxu1 %vm3286_vm2, %v2806_v22  ;;  %v3337_v22 = vld [vmem:[#allocation7] sm:$0xff] }
 0x193   :  { %v2816_v26 = vpack.c.bf16 %v2924_v24, %v2923_v25 }
 0x195   :  { %2818 = vmatprep.subr.msk.bf16.mxu0 %vm3286_vm2, %v2816_v26 }
 0x196   :  { %2821 = vmatpush3.bf16.xpose.msk.msra.mxu0 %vm3286_vm2, %v2816_v26 }
 0x197   :  { %2679 = vmatprep.subr.mxu0 %v3337_v22 }
 0x199   :  { %2651 = vmatmul.mubr.msk.f32.vlgmr.msra.gmra.mrb[0].mxu1 %vm186_vm1, %v3262_v12 }
 0x19d   :  { %2665 = vmatmul.mubr.msk.f32.vlgmr.msra.gmra.mrb[4].mxu0 %vm186_vm1, %v383_v27 }
 0x19e   :  { %2680 = vmatpush3.msra.mxu0 %v3337_v22 }
 0x26c   :  { %v2652_v29 = vpop.f32.mrb[0].mxu1 }
 0x26d   :  { %v261_v30 = vpop.f32.mrb[1].mxu1  ;;  %v274_v31 = vsel %vm270_vm3, %v2652_v29, -inf }
 0x26e   :  { %275 = vmax.xlane.f32.xlu1 %v274_v31  ;;  %v271_v32 = vsel %vm270_vm3, %v261_v30, -inf }
 0x26f   :  { %272 = vmax.xlane.f32.xlu0 %v271_v32 }
 0x270   :  { %v2666_v33 = vpop.f32.mrb[4].mxu0 }
 0x271   :  { %v462_v34 = vpop.f32.mrb[5].mxu0  ;;  %v474_v36 = vsel %vm270_vm3, %v2666_v33, -inf }
 0x272   :  { %v471_v35 = vsel %vm270_vm3, %v462_v34, -inf }
 0x273   :  { %472 = vmax.xlane.f32.xlu0 %v471_v35  ;;  %v3356_v35 = vadd.f32 %v3259_v10, %v3301_v28 }
 0x277   :  { %475 = vmax.xlane.f32.xlu0 %v474_v36 }
 0x2fb   :  { %v276_v37 = vpop.xlane.xlu1 %275 }
 0x2fc   :  { %v278_v38 = vsub.f32 %v2652_v29, %v276_v37  ;;  %v273_v39 = vpop.xlane.xlu0 %272 }
 0x2fd   :  { %v277_v40 = vsub.f32 %v261_v30, %v273_v39 }
 0x2fe   :  { %v281_v41 = vmul.f32 1.442695, %v278_v38 }
 0x2ff   :  { %v279_v42 = vmul.f32 1.442695, %v277_v40 }
 0x300   :  { %2995 = vpow2.f32 %v281_v41  ;;  %v473_v43 = vpop.xlane.xlu0 %472 }
 0x301   :  { %2997 = vpow2.f32 %v279_v42  ;;  %v477_v44 = vsub.f32 %v462_v34, %v473_v43 }
 0x303   :  { %v479_v45 = vmul.f32 1.442695, %v477_v44  ;;  %v3371_v44 = vadd.f32 %v3281_v16, %v3259_v10 }
 0x304   :  { %v476_v46 = vpop.xlane.xlu0 %475 }
 0x305   :  { %2999 = vpow2.f32 %v479_v45  ;;  %v478_v47 = vsub.f32 %v2666_v33, %v476_v46  ;;  %v3377_v45 = vpack.i.bf16 %v3371_v44, %v3356_v35 }
 0x307   :  { %v481_v48 = vmul.f32 1.442695, %v478_v47 }
 0x309   :  { %3001 = vpow2.f32 %v481_v48 }
 0x30a   :  { %v2996_v49 = vpop.eup %2995 }
 0x30b   :  { %v2998_v50 = vpop.eup %2997  ;;  %v286_v51 = vsel %vm270_vm3, %v2996_v49, 0.0 }
 0x30c   :  { %287 = vadd.xlane.f32.xlu0 %v286_v51  ;;  %v283_v52 = vsel %vm270_vm3, %v2998_v50, 0.0 }
 0x30d   :  { %284 = vadd.xlane.f32.xlu1 %v283_v52 }
 0x30f   :  { %v3000_v53 = vpop.eup %2999 }
 0x310   :  { %v483_v54 = vsel %vm270_vm3, %v3000_v53, 0.0 }
 0x311   :  { %484 = vadd.xlane.f32.xlu1 %v483_v54 }
 0x313   :  { %v3002_v55 = vpop.eup %3001 }
 0x314   :  { %v486_v56 = vsel %vm270_vm3, %v3002_v55, 0.0 }
 0x315   :  { %487 = vadd.xlane.f32.xlu0 %v486_v56 }
 0x322   :  { %2926 = vrot.lane.b32.xlu1 %v3273_v15, %s3161_s9 }
 0x326   :  { %2936 = vrot.lane.b32.xlu1 %v3273_v15, %s3162_s10 }
 0x32a   :  { %742 = vrot.lane.b32.xlu1 %v3265_v14, %s3163_s11 }
 0x32b   :  { %2931 = vrot.lane.b32.xlu0 %v3273_v15, %s3164_s12 }
 0x32e   :  { %2941 = vrot.lane.b32.xlu1 %v3273_v15, %s3165_s13 }
 0x32f   :  { %744 = vrot.lane.b32.xlu0 %v3262_v12, %s3163_s11 }
 0x332   :  { %1027 = vrot.lane.b32.xlu1 %v3262_v12, %s3166_s14 }
 0x333   :  { %1025 = vrot.lane.b32.xlu0 %v3265_v14, %s3166_s14 }
 0x399   :  { %v288_v57 = vpop.xlane.xlu0 %287 }
 0x39a   :  { %v285_v58 = vpop.xlane.xlu1 %284 }
 0x39b   :  { %3003 = vrcp.f32 %v285_v58 }
 0x39c   :  { %3005 = vrcp.f32 %v288_v57 }
 0x39e   :  { %v485_v59 = vpop.xlane.xlu1 %484 }
 0x39f   :  { %3007 = vrcp.f32 %v485_v59 }
 0x3a2   :  { %v2927_v60 = vpop.permute.xlu1 %2926  ;;  %v488_v61 = vpop.xlane.xlu0 %487 }
 0x3a3   :  { %v2929_v62 = vunpack.i.h.bf16 %v2927_v60  ;;  %v2928_v63 = vunpack.i.l.bf16 %v2927_v60  ;;  %3009 = vrcp.f32 %v488_v61 }
 0x3a5   :  { %v3004_v0 = vpop.eup %3003  ;;  %v2812_v1 = vpack.c.bf16 %v2929_v62, %v2928_v63 }
 0x3a6   :  { %v3006_v2 = vpop.eup %3005  ;;  %v2932_v3 = vpop.permute.xlu0 %2931  ;;  %v291_v4 = vmul.f32 %v3004_v0, %v2998_v50 }
 0x3a7   :  { %v2934_v5 = vunpack.i.h.bf16 %v2932_v3  ;;  %v2933_v6 = vunpack.i.l.bf16 %v2932_v3  ;;  %2813 = vmatprep.subr.bf16.mxu1 %v2812_v1  ;;  %v292_v8 = vmul.f32 %v3006_v2, %v2996_v49  ;;  %v2937_v9 = vpop.permute.xlu1 %2936  ;;  %v3396_v3 = vld [vmem:[#allocation7 + $0x10] sm:$0xff] }
 0x3a8   :  { %2815 = vmatpush3.bf16.msra.mxu1 %v2812_v1  ;;  %2657 = vmatprep.mubr.msk.f32.mxu1 %vm270_vm3, %v291_v4  ;;  %v2939_v14 = vunpack.i.h.bf16 %v2937_v9  ;;  %v2938_v17 = vunpack.i.l.bf16 %v2937_v9 }
 0x3a9   :  { %v3008_v7 = vpop.eup %3007  ;;  %v2822_v11 = vpack.c.bf16 %v2934_v5, %v2933_v6 }
 0x3aa   :  { %v491_v12 = vmul.f32 %v3008_v7, %v3000_v53  ;;  %v2826_v20 = vpack.c.bf16 %v2939_v14, %v2938_v17  ;;  %v745_v33 = vpop.permute.xlu0 %744 }
 0x3ab   :  { %2658 = vmatmul.mubr.msk.f32.vlgmr.msra.gmra.mrb[2].mxu1 %vm270_vm3, %v292_v8  ;;  %2823 = vmatprep.subr.bf16.mxu1 %v2822_v11  ;;  %v743_v23 = vpop.permute.xlu1 %742 }
 0x3ac   :  { %2825 = vmatpush3.bf16.msra.mxu1 %v2822_v11  ;;  %2671 = vmatprep.mubr.msk.f32.mxu1 %vm270_vm3, %v491_v12 }
 0x3ad   :  { %v3010_v18 = vpop.eup %3009  ;;  %2674 = vmatprep.subr.mxu1 %v3328_v13 }
 0x3ae   :  { %v492_v19 = vmul.f32 %v3010_v18, %v3002_v55  ;;  %v1026_v34 = vpop.permute.xlu0 %1025 }
 0x3af   :  { %v2942_v25 = vpop.permute.xlu1 %2941 }
 0x3b0   :  { %2672 = vmatmul.mubr.msk.f32.vlgmr.msra.gmra.mrb[4].mxu1 %vm270_vm3, %v492_v19  ;;  %v2944_v27 = vunpack.i.h.bf16 %v2942_v25  ;;  %v2943_v29 = vunpack.i.l.bf16 %v2942_v25 }
 0x3b1   :  { %2675 = vmatpush3.msra.mxu1 %v3328_v13 }
 0x3b2   :  { %2828 = vmatprep.subr.msk.bf16.mxu1 %vm3286_vm2, %v2826_v20  ;;  %v2836_v32 = vpack.c.bf16 %v2944_v27, %v2943_v29 }
 0x3b3   :  { %v1028_v36 = vpop.permute.xlu1 %1027 }
 0x47e   :  { %v2659_v24 = vpop.f32.mrb[2].mxu1 }
 0x47f   :  { %v371_v26 = vpop.f32.mrb[3].mxu1 }
 0x480   :  { %2681 = vmatprep.mubr.msk.f32.mxu0 %vm186_vm1, %v371_v26 }
 0x481   :  { %2682 = vmatmul.mubr.msk.f32.vlgmr.msra.gmra.mrb[6].mxu0 %vm186_vm1, %v2659_v24 }
 0x483   :  { %v2673_v30 = vpop.f32.mrb[4].mxu1 }
 0x484   :  { %v571_v31 = vpop.f32.mrb[5].mxu1 }
 0x485   :  { %2676 = vmatprep.mubr.msk.f32.mxu1 %vm186_vm1, %v571_v31 }
 0x486   :  { %2677 = vmatmul.mubr.msk.f32.vlgmr.msra.gmra.mrb[6].mxu1 %vm186_vm1, %v2673_v30 }
 0x487   :  { %2831 = vmatpush3.bf16.xpose.msk.msra.mxu1 %vm3286_vm2, %v2826_v20  ;;  %2688 = vmatprep.mubr.msk.f32.mxu1 %vm186_vm1, %v743_v23 }
 0x488   :  { %2838 = vmatprep.subr.msk.bf16.mxu1 %vm3286_vm2, %v2836_v32 }
 0x48e   :  { %2689 = vmatmul.mubr.msk.f32.vlgmr.msra.gmra.mrb[8].mxu1 %vm186_vm1, %v745_v33 }
 0x48f   :  { %2841 = vmatpush3.bf16.xpose.msk.msra.mxu1 %vm3286_vm2, %v2836_v32  ;;  %2707 = vmatprep.mubr.msk.f32.mxu1 %vm186_vm1, %v1026_v34 }
 0x496   :  { %2708 = vmatmul.mubr.msk.f32.vlgmr.msra.gmra.mrb[10].mxu1 %vm186_vm1, %v1028_v36 }
 0x497   :  { %2726 = vmatprep.mubr.msk.f32.mxu1 %vm186_vm1, %v3356_v35 }
 0x559   :  { %v3361_v37 = vpop.f32.mrb[6].mxu1 }
 0x55a   :  { %v3363_v38 = vpop.f32.mrb[7].mxu1 }
 0x561   :  { %v2690_v39 = vpop.f32.mrb[8].mxu1 }
 0x562   :  { %v824_v40 = vpop.f32.mrb[9].mxu1  ;;  %v836_v41 = vsel %vm270_vm3, %v2690_v39, -inf }
 0x563   :  { %837 = vmax.xlane.f32.xlu1 %v836_v41  ;;  %v833_v42 = vsel %vm270_vm3, %v824_v40, -inf }
 0x564   :  { %834 = vmax.xlane.f32.xlu0 %v833_v42 }
 0x569   :  { %v3367_v28 = vpop.f32.mrb[10].mxu1 }
 0x56a   :  { %v1107_v43 = vpop.f32.mrb[11].mxu1  ;;  %v1119_v0 = vsel %vm270_vm3, %v3367_v28, -inf }
 0x56b   :  { %v1116_v46 = vsel %vm270_vm3, %v1107_v43, -inf }
 0x574   :  { %2946 = vrot.lane.b32.xlu1 %v3273_v15, %s3167_s15 }
 0x578   :  { %2956 = vrot.lane.b32.xlu1 %v3377_v45, %s3160_s8 }
 0x57c   :  { %1516 = vrot.lane.b32.xlu1 %v3356_v35, %s3158_s7 }
 0x5a0   :  { %1117 = vmax.xlane.f32.xlu1 %v1116_v46 }
 0x5f0   :  { %v838_v47 = vpop.xlane.xlu1 %837 }
 0x5f1   :  { %v840_v10 = vsub.f32 %v2690_v39, %v838_v47  ;;  %v835_v16 = vpop.xlane.xlu0 %834 }
 0x5f2   :  { %v839_v48 = vsub.f32 %v824_v40, %v835_v16 }
 0x5f3   :  { %v843_v49 = vmul.f32 1.442695, %v840_v10 }
 0x5f4   :  { %v841_v50 = vmul.f32 1.442695, %v839_v48  ;;  %v2947_v51 = vpop.permute.xlu1 %2946 }
 0x5f5   :  { %v2949_v52 = vunpack.i.h.bf16 %v2947_v51  ;;  %v2948_v53 = vunpack.i.l.bf16 %v2947_v51 }
 0x5f6   :  { %3011 = vpow2.f32 %v841_v50 }
 0x5f7   :  { %v2832_v54 = vpack.c.bf16 %v2949_v52, %v2948_v53  ;;  %3013 = vpow2.f32 %v843_v49 }
 0x5f8   :  { %v2957_v59 = vpop.permute.xlu1 %2956 }
 0x5f9   :  { %2833 = vmatprep.subr.bf16.mxu0 %v2832_v54  ;;  %v2959_v7 = vunpack.i.h.bf16 %v2957_v59  ;;  %v2958_v8 = vunpack.i.l.bf16 %v2957_v59 }
 0x5fa   :  { %2835 = vmatpush3.bf16.msra.mxu0 %v2832_v54 }
 0x5fb   :  { %2698 = vmatprep.subr.mxu0 %v3396_v3  ;;  %v2856_v18 = vpack.c.bf16 %v2959_v7, %v2958_v8 }
 0x5fc   :  { %v1517_v60 = vpop.permute.xlu1 %1516 }
 0x600   :  { %v3012_v55 = vpop.eup %3011 }
 0x601   :  { %v845_v56 = vsel %vm270_vm3, %v3012_v55, 0.0  ;;  %v3014_v57 = vpop.eup %3013 }
 0x602   :  { %846 = vadd.xlane.f32.xlu0 %v845_v56  ;;  %v848_v58 = vsel %vm270_vm3, %v3014_v57, 0.0 }
 0x606   :  { %849 = vadd.xlane.f32.xlu0 %v848_v58 }
 0x61c   :  { %2951 = vrot.lane.b32.xlu0 %v3377_v45, %s3159_s2 }
 0x620   :  { %1518 = vrot.lane.b32.xlu0 %v3371_v44, %s3158_s7 }
 0x62d   :  { %v1118_v61 = vpop.xlane.xlu1 %1117 }
 0x62e   :  { %v1122_v62 = vsub.f32 %v1107_v43, %v1118_v61 }
 0x630   :  { %v1124_v63 = vmul.f32 1.442695, %v1122_v62 }
 0x632   :  { %3015 = vpow2.f32 %v1124_v63 }
 0x63c   :  { %v3392_v1 = vpop.eup %3015 }
 0x63d   :  { %v1128_v2 = vsel %vm270_vm3, %v3392_v1, 0.0 }
 0x63f   :  { %1120 = vmax.xlane.f32.xlu0 %v1119_v0 }
 0x643   :  { %1129 = vadd.xlane.f32.xlu0 %v1128_v2 }
 0x659   :  { %2961 = vrot.lane.b32.xlu0 %v3273_v15, %s3168_s16 }
 0x65d   :  { %1880 = vrot.lane.b32.xlu0 %v3371_v44, %s3163_s11 }
 0x68f   :  { %v847_v4 = vpop.xlane.xlu0 %846 }
 0x690   :  { %3017 = vrcp.f32 %v847_v4 }
 0x693   :  { %v850_v5 = vpop.xlane.xlu0 %849 }
 0x694   :  { %3019 = vrcp.f32 %v850_v5 }
 0x697   :  { %v2952_v6 = vpop.permute.xlu0 %2951 }
 0x698   :  { %v2954_v9 = vunpack.i.h.bf16 %v2952_v6  ;;  %v2953_v11 = vunpack.i.l.bf16 %v2952_v6 }
 0x69a   :  { %v3018_v12 = vpop.eup %3017  ;;  %v2846_v14 = vpack.c.bf16 %v2954_v9, %v2953_v11 }
 0x69b   :  { %v853_v17 = vmul.f32 %v3018_v12, %v3012_v55  ;;  %v1519_v20 = vpop.permute.xlu0 %1518 }
 0x69c   :  { %2848 = vmatprep.subr.msk.bf16.mxu1 %vm3286_vm2, %v2846_v14 }
 0x69d   :  { %2695 = vmatprep.mubr.msk.f32.mxu0 %vm270_vm3, %v853_v17  ;;  %2851 = vmatpush3.bf16.xpose.msk.msra.mxu1 %vm3286_vm2, %v2846_v14 }
 0x69e   :  { %v3020_v15 = vpop.eup %3019  ;;  %2858 = vmatprep.subr.msk.bf16.mxu1 %vm3286_vm2, %v2856_v18 }
 0x69f   :  { %v854_v19 = vmul.f32 %v3020_v15, %v3014_v57  ;;  %v3439_v57 = vld [vmem:[#allocation7 + $0x18] sm:$0xff] }
 0x6a1   :  { %2696 = vmatmul.mubr.msk.f32.vlgmr.msra.gmra.mrb[8].mxu0 %vm270_vm3, %v854_v19 }
 0x6a2   :  { %2699 = vmatpush3.msra.mxu0 %v3396_v3 }
 0x6a4   :  { %2727 = vmatmul.mubr.msk.f32.vlgmr.msra.gmra.mrb[12].mxu1 %vm186_vm1, %v3371_v44 }
 0x6a5   :  { %2861 = vmatpush3.bf16.xpose.msk.msra.mxu1 %vm3286_vm2, %v2856_v18  ;;  %2740 = vmatprep.mubr.msk.f32.mxu1 %vm186_vm1, %v1517_v60 }
 0x6ac   :  { %2741 = vmatmul.mubr.msk.f32.vlgmr.msra.gmra.mrb[14].mxu1 %vm186_vm1, %v1519_v20 }
 0x6cc   :  { %v1121_v23 = vpop.xlane.xlu0 %1120 }
 0x6cd   :  { %v1123_v24 = vsub.f32 %v3367_v28, %v1121_v23 }
 0x6cf   :  { %v1126_v25 = vmul.f32 1.442695, %v1123_v24 }
 0x6d0   :  { %v1130_v26 = vpop.xlane.xlu0 %1129 }
 0x6d1   :  { %3021 = vpow2.f32 %v1126_v25 }
 0x6d2   :  { %3023 = vrcp.f32 %v1130_v26 }
 0x6d4   :  { %v2962_v27 = vpop.permute.xlu0 %2961 }
 0x6d5   :  { %v2964_v29 = vunpack.i.h.bf16 %v2962_v27  ;;  %v2963_v30 = vunpack.i.l.bf16 %v2962_v27 }
 0x6d7   :  { %v2842_v31 = vpack.c.bf16 %v2964_v29, %v2963_v30 }
 0x6d8   :  { %v1881_v52 = vpop.permute.xlu0 %1880 }
 0x6d9   :  { %2843 = vmatprep.subr.bf16.mxu0 %v2842_v31 }
 0x6db   :  { %v3022_v32 = vpop.eup %3021 }
 0x6dc   :  { %v1131_v33 = vsel %vm270_vm3, %v3022_v32, 0.0  ;;  %v3024_v28 = vpop.eup %3023 }
 0x6dd   :  { %1132 = vadd.xlane.f32.xlu1 %v1131_v33  ;;  %v1136_v10 = vmul.f32 %v3024_v28, %v3392_v1 }
 0x6ee   :  { %2966 = vrot.lane.b32.xlu1 %v3377_v45, %s3162_s10 }
 0x6f2   :  { %1878 = vrot.lane.b32.xlu1 %v3356_v35, %s3163_s11 }
 0x76a   :  { %v1133_v34 = vpop.xlane.xlu1 %1132 }
 0x76b   :  { %3025 = vrcp.f32 %v1133_v34 }
 0x76e   :  { %v2967_v36 = vpop.permute.xlu1 %2966 }
 0x76f   :  { %v2969_v39 = vunpack.i.h.bf16 %v2967_v36  ;;  %v2968_v40 = vunpack.i.l.bf16 %v2967_v36 }
 0x771   :  { %v2866_v41 = vpack.c.bf16 %v2969_v39, %v2968_v40 }
 0x772   :  { %v1879_v42 = vpop.permute.xlu1 %1878 }
 0x773   :  { %2868 = vmatprep.subr.msk.bf16.mxu1 %vm3286_vm2, %v2866_v41  ;;  %2764 = vmatprep.mubr.msk.f32.mxu1 %vm186_vm1, %v1879_v42 }
 0x774   :  { %v2697_v43 = vpop.f32.mrb[8].mxu0  ;;  %2871 = vmatpush3.bf16.xpose.msk.msra.mxu1 %vm3286_vm2, %v2866_v41 }
 0x775   :  { %v933_v46 = vpop.f32.mrb[9].mxu0  ;;  %v3026_v47 = vpop.eup %3025 }
 0x776   :  { %2700 = vmatprep.mubr.msk.f32.mxu0 %vm186_vm1, %v933_v46  ;;  %v1137_v50 = vmul.f32 %v3026_v47, %v3022_v32 }
 0x777   :  { %2701 = vmatmul.mubr.msk.f32.vlgmr.msra.gmra.mrb[6].mxu0 %vm186_vm1, %v2697_v43  ;;  %v2728_v16 = vpop.f32.mrb[12].mxu1 }
 0x778   :  { %2845 = vmatpush3.bf16.msra.mxu0 %v2842_v31  ;;  %2714 = vmatprep.mubr.msk.f32.mxu0 %vm270_vm3, %v1136_v10  ;;  %v1398_v48 = vpop.f32.mrb[13].mxu1  ;;  %v1410_v49 = vsel %vm270_vm3, %v2728_v16, -inf }
 0x779   :  { %1411 = vmax.xlane.f32.xlu0 %v1410_v49  ;;  %v1407_v51 = vsel %vm270_vm3, %v1398_v48, -inf  ;;  %2717 = vmatprep.subr.mxu0 %v3439_v57 }
 0x77a   :  { %1408 = vmax.xlane.f32.xlu1 %v1407_v51 }
 0x77b   :  { %2715 = vmatmul.mubr.msk.f32.vlgmr.msra.gmra.mrb[10].mxu0 %vm270_vm3, %v1137_v50  ;;  %2765 = vmatmul.mubr.msk.f32.vlgmr.msra.gmra.mrb[16].mxu1 %vm186_vm1, %v1881_v52 }
 0x77c   :  { %2718 = vmatpush3.msra.mxu0 %v3439_v57 }
 0x77f   :  { %v2742_v53 = vpop.f32.mrb[14].mxu1 }
 0x780   :  { %v1598_v54 = vpop.f32.mrb[15].mxu1  ;;  %v1610_v55 = vsel %vm270_vm3, %v2742_v53, -inf }
 0x781   :  { %1611 = vmax.xlane.f32.xlu1 %v1610_v55  ;;  %v1607_v56 = vsel %vm270_vm3, %v1598_v54, -inf }
 0x782   :  { %1608 = vmax.xlane.f32.xlu0 %v1607_v56 }
 0x806   :  { %v1412_v58 = vpop.xlane.xlu0 %1411 }
 0x807   :  { %v1414_v59 = vsub.f32 %v2728_v16, %v1412_v58  ;;  %v1409_v60 = vpop.xlane.xlu1 %1408 }
 0x808   :  { %v1413_v61 = vsub.f32 %v1398_v48, %v1409_v60 }
 0x809   :  { %v1417_v62 = vmul.f32 1.442695, %v1414_v59 }
 0x80a   :  { %v1415_v63 = vmul.f32 1.442695, %v1413_v61  ;;  %v3483_v61 = vld [vmem:[%s3535_s4] ss:$0 sm:$0xff]  ;;  %s3169_s4 = smov [#allocation8]  }
 0x80b   :  { %3027 = vpow2.f32 %v1417_v62  ;;  %s2453_s18 = sshll.u32 %s3169_s4, 4  ;;  %s2454_s18 = int_to_ptr.vmem [resolvable:$true] %s2453_s18 }
 0x80c   :  { %3029 = vpow2.f32 %v1415_v63  ;;  %s3125_s19 = scalar_lea.vmem %s2454_s18, 512  ;;  %p3130_p11 = scmp.lt.s32.totalorder %s2454_s18, %s2454_s18 }
 0x80d   :  { %p3126_p10 = scmp.ne.s32.totalorder %s2454_s18, %s3125_s19  ;;  %p3131_p12 = scmp.lt.s32.totalorder %s3125_s19, %s3125_s19 }
 0x80e   :  { %v1612_v0 = vpop.xlane.xlu1 %1611 }
 0x80f   :  { %v1614_v1 = vsub.f32 %v2742_v53, %v1612_v0  ;;  %v1609_v2 = vpop.xlane.xlu0 %1608  ;;  %p3132_p13 = por %p3131_p12, %p3130_p11 }
 0x810   :  { %v1613_v4 = vsub.f32 %v1598_v54, %v1609_v2 }
 0x811   :  { %v1617_v5 = vmul.f32 1.442695, %v1614_v1  ;;  %p3133_p0 = pnand %p3132_p13, %p3126_p10 }
 0x812   :  { %v1615_v6 = vmul.f32 1.442695, %v1613_v4 }
 0x813   :  { %3031 = vpow2.f32 %v1617_v5 }
 0x814   :  { %3033 = vpow2.f32 %v1615_v6 }
 0x815   :  { %v3028_v7 = vpop.eup %3027 }
 0x816   :  { %v3030_v8 = vpop.eup %3029  ;;  %v1422_v9 = vsel %vm270_vm3, %v3028_v7, 0.0 }
 0x817   :  { %1423 = vadd.xlane.f32.xlu1 %v1422_v9  ;;  %v1419_v11 = vsel %vm270_vm3, %v3030_v8, 0.0 }
 0x818   :  { %1420 = vadd.xlane.f32.xlu0 %v1419_v11 }
 0x81d   :  { %v3032_v12 = vpop.eup %3031 }
 0x81e   :  { %v3034_v14 = vpop.eup %3033  ;;  %v1622_v17 = vsel %vm270_vm3, %v3032_v12, 0.0 }
 0x81f   :  { %1623 = vadd.xlane.f32.xlu1 %v1622_v17  ;;  %v1619_v18 = vsel %vm270_vm3, %v3034_v14, 0.0 }
 0x820   :  { %1620 = vadd.xlane.f32.xlu0 %v1619_v18 }
 0x830   :  { %2976 = vrot.lane.b32.xlu1 %v3377_v45, %s3164_s12 }
 0x834   :  { %2981 = vrot.lane.b32.xlu1 %v3377_v45, %s3165_s13 }
 0x836   :  { %2971 = vrot.lane.b32.xlu0 %v3377_v45, %s3161_s9 }
 0x838   :  { %2163 = vrot.lane.b32.xlu1 %v3371_v44, %s3166_s14 }
 0x83a   :  { %2161 = vrot.lane.b32.xlu0 %v3356_v35, %s3166_s14 }
 0x84e   :  { %v2716_v15 = vpop.f32.mrb[10].mxu0  ;;  %v2766_v19 = vpop.f32.mrb[16].mxu1 }
 0x84f   :  { %v1216_v20 = vpop.f32.mrb[11].mxu0  ;;  %v1960_v23 = vpop.f32.mrb[17].mxu1  ;;  %v1972_v25 = vsel %vm270_vm3, %v2766_v19, -inf }
 0x850   :  { %2719 = vmatprep.mubr.msk.f32.mxu0 %vm186_vm1, %v1216_v20  ;;  %v1969_v24 = vsel %vm270_vm3, %v1960_v23, -inf }
 0x851   :  { %2720 = vmatmul.mubr.msk.f32.vlgmr.msra.gmra.mrb[6].mxu0 %vm186_vm1, %v2716_v15 }
 0x859   :  { %1970 = vmax.xlane.f32.xlu0 %v1969_v24 }
 0x85c   :  { %1973 = vmax.xlane.f32.xlu1 %v1972_v25 }
 0x86d   :  { %2986 = vrot.lane.b32.xlu1 %v3377_v45, %s3167_s15 }
 0x871   :  { %2991 = vrot.lane.b32.xlu1 %v3377_v45, %s3168_s16 }
 0x8a4   :  { %v1424_v44 = vpop.xlane.xlu1 %1423 }
 0x8a5   :  { %v1421_v35 = vpop.xlane.xlu0 %1420 }
 0x8a6   :  { %3035 = vrcp.f32 %v1421_v35 }
 0x8a7   :  { %3037 = vrcp.f32 %v1424_v44 }
 0x8ac   :  { %v1624_v26 = vpop.xlane.xlu1 %1623 }
 0x8ad   :  { %v1621_v27 = vpop.xlane.xlu0 %1620 }
 0x8ae   :  { %3039 = vrcp.f32 %v1621_v27 }
 0x8af   :  { %3041 = vrcp.f32 %v1624_v26 }
 0x8b0   :  { %v3036_v29 = vpop.eup %3035  ;;  %v2977_v30 = vpop.permute.xlu1 %2976 }
 0x8b1   :  { %v2972_v31 = vpop.permute.xlu0 %2971  ;;  %v1427_v32 = vmul.f32 %v3036_v29, %v3030_v8  ;;  %v2979_v33 = vunpack.i.h.bf16 %v2977_v30  ;;  %v2978_v34 = vunpack.i.l.bf16 %v2977_v30  ;;  %v3038_v41 = vpop.eup %3037 }
 0x8b2   :  { %v2974_v36 = vunpack.i.h.bf16 %v2972_v31  ;;  %v2973_v39 = vunpack.i.l.bf16 %v2972_v31  ;;  %v1428_v16 = vmul.f32 %v3038_v41, %v3028_v7 }
 0x8b3   :  { %2733 = vmatprep.mubr.msk.f32.mxu0 %vm270_vm3, %v1427_v32  ;;  %v2862_v46 = vpack.c.bf16 %v2979_v33, %v2978_v34 }
 0x8b4   :  { %v2852_v40 = vpack.c.bf16 %v2974_v36, %v2973_v39  ;;  %v2982_v45 = vpop.permute.xlu1 %2981 }
 0x8b5   :  { %v2984_v42 = vunpack.i.h.bf16 %v2982_v45  ;;  %v2983_v28 = vunpack.i.l.bf16 %v2982_v45  ;;  %v2162_v43 = vpop.permute.xlu0 %2161 }
 0x8b6   :  { %2853 = vmatprep.subr.bf16.mxu0 %v2852_v40  ;;  %2783 = vmatprep.mubr.msk.f32.mxu1 %vm186_vm1, %v2162_v43 }
 0x8b7   :  { %v2876_v47 = vpack.c.bf16 %v2984_v42, %v2983_v28  ;;  %2855 = vmatpush3.bf16.msra.mxu0 %v2852_v40 }
 0x8b8   :  { %v3040_v10 = vpop.eup %3039  ;;  %2863 = vmatprep.subr.bf16.mxu0 %v2862_v46  ;;  %v2164_v51 = vpop.permute.xlu1 %2163 }
 0x8b9   :  { %v3042_v48 = vpop.eup %3041  ;;  %2878 = vmatprep.subr.msk.bf16.mxu1 %vm3286_vm2, %v2876_v47  ;;  %v1627_v49 = vmul.f32 %v3040_v10, %v3034_v14 }
 0x8ba   :  { %2734 = vmatmul.mubr.msk.f32.vlgmr.msra.gmra.mrb[12].mxu0 %vm270_vm3, %v1428_v16  ;;  %2881 = vmatpush3.bf16.xpose.msk.msra.mxu1 %vm3286_vm2, %v2876_v47  ;;  %v1628_v50 = vmul.f32 %v3042_v48, %v3032_v12 }
 0x8bb   :  { %2865 = vmatpush3.bf16.msra.mxu0 %v2862_v46  ;;  %2747 = vmatprep.mubr.msk.f32.mxu0 %vm270_vm3, %v1627_v49 }
 0x8bc   :  { %2750 = vmatprep.subr.mxu0 %v3328_v13 }
 0x8be   :  { %2748 = vmatmul.mubr.msk.f32.vlgmr.msra.gmra.mrb[14].mxu0 %vm270_vm3, %v1628_v50 }
 0x8bf   :  { %2751 = vmatpush3.msra.mxu0 %v3328_v13 }
 0x8c0   :  { %2755 = vmatprep.subr.mxu0 %v3337_v22 }
 0x8c1   :  { %2784 = vmatmul.mubr.msk.f32.vlgmr.msra.gmra.mrb[18].mxu1 %vm186_vm1, %v2164_v51 }
 0x8e6   :  { %v1971_v52 = vpop.xlane.xlu0 %1970 }
 0x8e7   :  { %v1975_v53 = vsub.f32 %v1960_v23, %v1971_v52 }
 0x8e9   :  { %v1977_v54 = vmul.f32 1.442695, %v1975_v53  ;;  %v1974_v21 = vpop.xlane.xlu1 %1973 }
 0x8ea   :  { %v1976_v55 = vsub.f32 %v2766_v19, %v1974_v21 }
 0x8eb   :  { %3043 = vpow2.f32 %v1977_v54 }
 0x8ec   :  { %v1979_v56 = vmul.f32 1.442695, %v1976_v55 }
 0x8ed   :  { %v2987_v6 = vpop.permute.xlu1 %2986 }
 0x8ee   :  { %3045 = vpow2.f32 %v1979_v56  ;;  %v2989_v11 = vunpack.i.h.bf16 %v2987_v6  ;;  %v2988_v12 = vunpack.i.l.bf16 %v2987_v6 }
 0x8f1   :  { %v2992_v20 = vpop.permute.xlu1 %2991 }
 0x8f2   :  { %v2994_v35 = vunpack.i.h.bf16 %v2992_v20  ;;  %v2993_v44 = vunpack.i.l.bf16 %v2992_v20 }
 0x8f4   :  { %v2882_v26 = vpack.c.bf16 %v2994_v35, %v2993_v44 }
 0x8f5   :  { %v3044_v58 = vpop.eup %3043 }
 0x8f6   :  { %v1981_v59 = vsel %vm270_vm3, %v3044_v58, 0.0 }
 0x8f7   :  { %1982 = vadd.xlane.f32.xlu0 %v1981_v59 }
 0x8f8   :  { %v3046_v60 = vpop.eup %3045 }
 0x8f9   :  { %v1984_v13 = vsel %vm270_vm3, %v3046_v60, 0.0 }
 0x8fb   :  { %1985 = vadd.xlane.f32.xlu0 %v1984_v13 }
 0x924   :  { %v2721_v62 = vpop.f32.mrb[6].mxu0 }
 0x925   :  { %v2886_v63 = vadd.f32 %v2721_v62, %v3361_v37  ;;  %v1297_v0 = vpop.f32.mrb[7].mxu0 }
 0x926   :  { %v2887_v1 = vadd.f32 %v1297_v0, %v3363_v38  ;;  %v2872_v38 = vpack.c.bf16 %v2989_v11, %v2988_v12 }
 0x927   :  { %v1315_v2 = vadd.f32 %v2886_v63, %v3483_v61 }
 0x928   :  { %v1314_v4 = vadd.f32 %v2887_v1, %v3483_v61 }
 0x929   :  { %1317 = vst.msk [vmem:[#allocation8 + $0x8] sm:$0xff] %vm77_vm0, %v1315_v2 }
 0x92a   :  { %1316 = vst.msk [vmem:[#allocation8] sm:$0xff] %vm77_vm0, %v1314_v4 }
 0x984   :  { %v1983_v5 = vpop.xlane.xlu0 %1982 }
 0x985   :  { %3047 = vrcp.f32 %v1983_v5 }
 0x988   :  { %v1986_v8 = vpop.xlane.xlu0 %1985 }
 0x989   :  { %3049 = vrcp.f32 %v1986_v8 }
 0x98d   :  { %v2735_v7 = vpop.f32.mrb[12].mxu0 }
 0x98e   :  { %v1507_v9 = vpop.f32.mrb[13].mxu0 }
 0x98f   :  { %v3048_v19 = vpop.eup %3047 }
 0x990   :  { %v1989_v25 = vmul.f32 %v3048_v19, %v3044_v58 }
 0x991   :  { %v2749_v37 = vpop.f32.mrb[14].mxu0 }
 0x992   :  { %v1707_v14 = vpop.f32.mrb[15].mxu0 }
 0x993   :  { %2752 = vmatprep.mubr.msk.f32.mxu0 %vm186_vm1, %v1707_v14  ;;  %v3050_v24 = vpop.eup %3049 }
 0x994   :  { %2753 = vmatmul.mubr.msk.f32.vlgmr.msra.gmra.mrb[16].mxu0 %vm186_vm1, %v2749_v37  ;;  %v2785_v17 = vpop.f32.mrb[18].mxu1 }
 0x995   :  { %2756 = vmatpush3.msra.mxu0 %v3337_v22  ;;  %2757 = vmatprep.mubr.msk.f32.mxu0 %vm186_vm1, %v1507_v9  ;;  %v2243_v18 = vpop.f32.mrb[19].mxu1  ;;  %v2255_v23 = vsel %vm270_vm3, %v2785_v17, -inf  ;;  %v1990_v22 = vmul.f32 %v3050_v24, %v3046_v60 }
 0x996   :  { %2873 = vmatprep.subr.bf16.mxu0 %v2872_v38  ;;  %v2252_v15 = vsel %vm270_vm3, %v2243_v18, -inf }
 0x997   :  { %2253 = vmax.xlane.f32.xlu0 %v2252_v15 }
 0x99b   :  { %2256 = vmax.xlane.f32.xlu0 %v2255_v23 }
 0x99c   :  { %2758 = vmatmul.mubr.msk.f32.vlgmr.msra.gmra.mrb[16].mxu0 %vm186_vm1, %v2735_v7 }
 0x99d   :  { %2875 = vmatpush3.bf16.msra.mxu0 %v2872_v38  ;;  %2771 = vmatprep.mubr.msk.f32.mxu0 %vm270_vm3, %v1989_v25 }
 0x99e   :  { %2774 = vmatprep.subr.mxu0 %v3396_v3 }
 0x9a0   :  { %2772 = vmatmul.mubr.msk.f32.vlgmr.msra.gmra.mrb[18].mxu0 %vm270_vm3, %v1990_v22 }
 0x9a1   :  { %2775 = vmatpush3.msra.mxu0 %v3396_v3 }
 0x9a2   :  { %2883 = vmatprep.subr.bf16.mxu0 %v2882_v26 }
 0xa24   :  { %v2254_v27 = vpop.xlane.xlu0 %2253 }
 0xa25   :  { %v2258_v29 = vsub.f32 %v2243_v18, %v2254_v27 }
 0xa27   :  { %v2260_v30 = vmul.f32 1.442695, %v2258_v29 }
 0xa28   :  { %v2257_v31 = vpop.xlane.xlu0 %2256 }
 0xa29   :  { %3051 = vpow2.f32 %v2260_v30  ;;  %v2259_v32 = vsub.f32 %v2785_v17, %v2257_v31 }
 0xa2b   :  { %v2262_v33 = vmul.f32 1.442695, %v2259_v32 }
 0xa2d   :  { %3053 = vpow2.f32 %v2262_v33 }
 0xa33   :  { %v3052_v34 = vpop.eup %3051 }
 0xa34   :  { %v2264_v36 = vsel %vm270_vm3, %v3052_v34, 0.0 }
 0xa35   :  { %2265 = vadd.xlane.f32.xlu0 %v2264_v36 }
 0xa37   :  { %v3054_v39 = vpop.eup %3053 }
 0xa38   :  { %v2267_v40 = vsel %vm270_vm3, %v3054_v39, 0.0 }
 0xa39   :  { %2268 = vadd.xlane.f32.xlu0 %v2267_v40 }
 0xa73   :  { %v2773_v45 = vpop.f32.mrb[18].mxu0 }
 0xa74   :  { %v2069_v41 = vpop.f32.mrb[19].mxu0 }
 0xa75   :  { %2776 = vmatprep.mubr.msk.f32.mxu0 %vm186_vm1, %v2069_v41 }
 0xa76   :  { %2777 = vmatmul.mubr.msk.f32.vlgmr.msra.gmra.mrb[16].mxu0 %vm186_vm1, %v2773_v45 }
 0xa77   :  { %2885 = vmatpush3.bf16.msra.mxu0 %v2882_v26 }
 0xa78   :  { %2793 = vmatprep.subr.mxu0 %v3439_v57 }
 0xac2   :  { %v2266_v3 = vpop.xlane.xlu0 %2265 }
 0xac3   :  { %3055 = vrcp.f32 %v2266_v3 }
 0xac6   :  { %v2269_v42 = vpop.xlane.xlu0 %2268 }
 0xac7   :  { %3057 = vrcp.f32 %v2269_v42 }
 0xacd   :  { %v3056_v28 = vpop.eup %3055 }
 0xace   :  { %v2272_v43 = vmul.f32 %v3056_v28, %v3052_v34 }
 0xad0   :  { %2790 = vmatprep.mubr.msk.f32.mxu0 %vm270_vm3, %v2272_v43 }
 0xad1   :  { %v3058_v46 = vpop.eup %3057 }
 0xad2   :  { %v2273_v47 = vmul.f32 %v3058_v46, %v3054_v39 }
 0xad4   :  { %2791 = vmatmul.mubr.msk.f32.vlgmr.msra.gmra.mrb[20].mxu0 %vm270_vm3, %v2273_v47 }
 0xad5   :  { %2794 = vmatpush3.msra.mxu0 %v3439_v57 }
 0xba7   :  { %v2792_v10 = vpop.f32.mrb[20].mxu0 }
 0xba8   :  { %v2352_v16 = vpop.f32.mrb[21].mxu0 }
 0xba9   :  { %2795 = vmatprep.mubr.msk.f32.mxu0 %vm186_vm1, %v2352_v16 }
 0xbaa   :  { %2796 = vmatmul.mubr.msk.f32.vlgmr.msra.gmra.mrb[16].mxu0 %vm186_vm1, %v2792_v10 }
 0xc7d   :  { %v2797_v48 = vpop.f32.mrb[16].mxu0 }
 0xc7e   :  { %v2445_v49 = vadd.f32 %v2797_v48, %v3483_v61  ;;  %v2433_v50 = vpop.f32.mrb[17].mxu0 }
 0xc7f   :  { %v2444_v51 = vadd.f32 %v3483_v61, %v2433_v50 }
 0xc80   :  { %2447 = vst.msk [vmem:[#allocation8 + $0x18] sm:$0xff] %vm77_vm0, %v2445_v49 }
 0xc81   :  { %2446 = vst.msk [vmem:[#allocation8 + $0x10] sm:$0xff] %vm77_vm0, %v2444_v51 }
 0xc82   :  { %3136 = shalt.err (!%p3133_p0)
}
 0xc83   :  { %s3137_s23 = scalar_lea.hbm %s3536_s5, 512 }
 0xc84   :  { %p3138_p1 = scmp.ne.s32.totalorder %s3536_s5, %s3137_s23  ;;  %p3141_p2 = scmp.lt.u32.totalorder %s3137_s23, %s3536_s5 }
 0xc86   :  { %p3143_p3 = pnand %p3141_p2, %p3138_p1 }
 0xc88   :  { %3146 = shalt.err (!%p3143_p3)
}
 0xc89   :  { %2459 = dma.vmem_to_hbm [thread:$0]  %s2454_s18, 512, %s3536_s5, [#allocation4], %s3155_s30, %s3155_s30, %s3156_s6  }
 0xc8a   :  { %3151 = dma.done.wait [#allocation4], 512  }
 0xc8b   :  { %3152 = vsyncadd [#allocation4], 4294966784 }
 0xc8c   :  { %2463 = vsyncpa [#allocation3], 1 }
 0xc8d   :  { %2464 = vsyncpa [#allocation6], 1 }
 0xc8e   :  { %2465 = vsyncpa [#allocation4], 1 }

</bundles_post_ra>
